<compile_context>
chip_gen: v5e
topology: v5e:2x2
jax: 0.10.0
libtpu: 0.0.40
codegen_flags: <defaults>
</compile_context>

<pallas_src>
import jax
import jax.numpy as jnp
from jax import lax
from jax.experimental import pallas as pl
from jax.experimental.pallas import tpu as pltpu

LN_EPS = 1e-5  # torch.nn.LayerNorm default


def _round_up(x, m):
    return (x + m - 1) // m * m


def _encoder_kernel(x_ref, w1_ref, b1_ref, w2_ref, b2_ref, w3_ref, b3_ref,
                    g_ref, beta_ref, o_ref):
    # ---- Linear(token_dim, 64) + ReLU  (MXU, f32 accumulate) ----
    h1 = jnp.dot(x_ref[...], w1_ref[...], preferred_element_type=jnp.float32)
    h1 = jnp.maximum(h1 + b1_ref[...], 0.0)

    # ---- Linear(64, 128) + ReLU ----
    h2 = jnp.dot(h1.astype(w2_ref.dtype), w2_ref[...],
                 preferred_element_type=jnp.float32)
    h2 = jnp.maximum(h2 + b2_ref[...], 0.0)

    # ---- Linear(128, projection_dim) ----
    y = jnp.dot(h2.astype(w3_ref.dtype), w3_ref[...],
                preferred_element_type=jnp.float32)
    y = y + b3_ref[...]

    # ---- LayerNorm over the true projection_dim lanes (no padding) ----
    # Two-pass variance E[(y-mean)^2] to avoid E[y^2]-mean^2 cancellation.
    inv_p = 1.0 / y.shape[-1]
    mean = jnp.sum(y, axis=-1, keepdims=True) * inv_p
    d = y - mean
    var = jnp.sum(d * d, axis=-1, keepdims=True) * inv_p
    y_norm = d * lax.rsqrt(var + LN_EPS)
    o_ref[...] = (y_norm * g_ref[...] + beta_ref[...]).astype(o_ref.dtype)


def prepare_encoder_params(w1, b1, w2, b2, w3, b3, gamma, beta,
                           *, compute_dtype=jnp.bfloat16):
    """One-time parameter prep, hoisted out of the per-call hot path.

    Weights are cast to the MXU operand dtype (bf16 by default; f32 accumulation
    happens in-kernel).  Biases / LayerNorm affine stay f32 and are reshaped to
    (1, H) rows so they broadcast over the batch tile.
    """
    cdt = compute_dtype
    f32 = jnp.float32
    return (w1.astype(cdt),
            b1.reshape(1, -1).astype(f32),
            w2.astype(cdt),
            b2.reshape(1, -1).astype(f32),
            w3.astype(cdt),
            b3.reshape(1, -1).astype(f32),
            gamma.reshape(1, -1).astype(f32),
            beta.reshape(1, -1).astype(f32))


def modality_token_encoder(tokens, params, *, max_tile=1024, out_dtype=None):
    """tokens: [token_size, token_dim] -> [token_size, projection_dim]."""
    w1, b1, w2, b2, w3, b3, g, beta = params
    B, D = tokens.shape
    P = w3.shape[1]
    cdt = w1.dtype
    out_dtype = tokens.dtype if out_dtype is None else out_dtype

    # Batch tiling: sublane-aligned tiles, >= 2 grid steps for large B (so both
    # v7x TensorCores get work), tail tile kept nearly full.  Tiny batches use a
    # single full-array block -> zero wrapper padding / slicing.
    sub = 16 if cdt == jnp.bfloat16 else 8
    if B < 2 * sub:
        tile_b, grid_b, Bp = B, 1, B
    else:
        n_steps = max(2, pl.cdiv(B, max_tile))
        tile_b = min(max_tile, _round_up(pl.cdiv(B, n_steps), sub))
        grid_b = pl.cdiv(B, tile_b)
        Bp = grid_b * tile_b

    x = tokens.astype(cdt)
    if Bp != B:
        x = jnp.zeros((Bp, D), cdt).at[:B].set(x)

    const = lambda i: (0, 0)  # weights / biases stay VMEM-resident across the grid

    out = pl.pallas_call(
        _encoder_kernel,
        out_shape=jax.ShapeDtypeStruct((Bp, P), out_dtype),
        grid_spec=pltpu.PrefetchScalarGridSpec(
            num_scalar_prefetch=0,
            grid=(grid_b,),
            in_specs=[
                pl.BlockSpec((tile_b, D), lambda i: (i, 0)),  # token tile (true D)
                pl.BlockSpec(w1.shape, const),                # W1
                pl.BlockSpec(b1.shape, const),                # b1
                pl.BlockSpec(w2.shape, const),                # W2
                pl.BlockSpec(b2.shape, const),                # b2
                pl.BlockSpec(w3.shape, const),                # W3
                pl.BlockSpec(b3.shape, const),                # b3
                pl.BlockSpec(g.shape, const),                 # gamma
                pl.BlockSpec(beta.shape, const),              # beta
            ],
            out_specs=pl.BlockSpec((tile_b, P), lambda i: (i, 0)),  # true P lanes
        ),
        compiler_params=pltpu.CompilerParams(
            dimension_semantics=("parallel",),   # shard batch grid across TCs (v7x)
            vmem_limit_bytes=48 * 1024 * 1024,   # safe on v7x's 64 MiB physical VMEM
        ),
    )(x, w1, b1, w2, b2, w3, b3, g, beta)

    return out if Bp == B else out[:B]


def reference(tokens, w1, b1, w2, b2, w3, b3, gamma, beta):
    h = jnp.maximum(tokens @ w1 + b1, 0.0)
    h = jnp.maximum(h @ w2 + b2, 0.0)
    y = h @ w3 + b3
    mean = jnp.mean(y, axis=-1, keepdims=True)
    var = jnp.mean((y - mean) ** 2, axis=-1, keepdims=True)
    return (y - mean) * lax.rsqrt(var + LN_EPS) * gamma + beta


if __name__ == "__main__":
    # Small shapes consistent with the module: token_size=8, token_dim=32,
    # projection_dim=32; hidden dims 64 and 128 are fixed by the module.
    TOKEN_SIZE, TOKEN_DIM, PROJ_DIM = 8, 32, 32
    H1, H2 = 64, 128

    key = jax.random.PRNGKey(0)
    kstd, ktok, kw1, kb1, kw2, kb2, kw3, kb3 = jax.random.split(key, 8)

    # audio_token ~ Normal(0, std) with std = U(0,1)*0.5 + 0.1 (as in the module).
    std = jax.random.uniform(kstd, ()) * 0.5 + 0.1
    audio_token = std * jax.random.normal(ktok, (TOKEN_SIZE, TOKEN_DIM), jnp.float32)

    # Linear params with torch-like uniform(-1/sqrt(fan_in), 1/sqrt(fan_in)) init.
    def lin_init(kw, kb, fan_in, fan_out):
        bound = 1.0 / (fan_in ** 0.5)
        w = jax.random.uniform(kw, (fan_in, fan_out), jnp.float32, -bound, bound)
        b = jax.random.uniform(kb, (fan_out,), jnp.float32, -bound, bound)
        return w, b

    w1, b1 = lin_init(kw1, kb1, TOKEN_DIM, H1)
    w2, b2 = lin_init(kw2, kb2, H1, H2)
    w3, b3 = lin_init(kw3, kb3, H2, PROJ_DIM)
    gamma = jnp.ones((PROJ_DIM,), jnp.float32)   # LayerNorm weight init
    beta = jnp.zeros((PROJ_DIM,), jnp.float32)   # LayerNorm bias init

    ref = reference(audio_token, w1, b1, w2, b2, w3, b3, gamma, beta)

    run = jax.jit(modality_token_encoder)

    # f32 MXU operands: exactness check against the reference.
    params_f32 = prepare_encoder_params(w1, b1, w2, b2, w3, b3, gamma, beta,
                                        compute_dtype=jnp.float32)
    out_f32 = jax.block_until_ready(run(audio_token, params_f32))
    assert out_f32.shape == (TOKEN_SIZE, PROJ_DIM)
    assert jnp.allclose(out_f32, ref, atol=1e-4, rtol=1e-4)

    # bf16 MXU operands (recommended default on v5e/v6e/v7x; f32 accumulation and
    # f32 ReLU/LayerNorm math) -> loosened tolerance is the expected precision trade.
    params_bf16 = prepare_encoder_params(w1, b1, w2, b2, w3, b3, gamma, beta)
    out_bf16 = jax.block_until_ready(run(audio_token, params_bf16))
    assert out_bf16.shape == (TOKEN_SIZE, PROJ_DIM)
    assert jnp.allclose(out_bf16, ref, atol=1e-1, rtol=1e-1)

    print("KERNEL_OK")
</pallas_src>

<mosaic_0001>
module attributes {stable_mosaic.version = 11 : i64} {
  func.func @_encoder_kernel(%arg0: i32, %arg1: memref<8x32xf32, #tpu.memory_space<vmem>>, %arg2: memref<32x64xf32, #tpu.memory_space<vmem>>, %arg3: memref<1x64xf32, #tpu.memory_space<vmem>>, %arg4: memref<64x128xf32, #tpu.memory_space<vmem>>, %arg5: memref<1x128xf32, #tpu.memory_space<vmem>>, %arg6: memref<128x32xf32, #tpu.memory_space<vmem>>, %arg7: memref<1x32xf32, #tpu.memory_space<vmem>>, %arg8: memref<1x32xf32, #tpu.memory_space<vmem>>, %arg9: memref<1x32xf32, #tpu.memory_space<vmem>>, %arg10: memref<8x32xf32, #tpu.memory_space<vmem>>) attributes {dimension_semantics = [#tpu.dimension_semantics<parallel>], iteration_bounds = array<i64: 1>, scalar_prefetch = 0 : i64, scratch_operands = 0 : i64, tpu.core_type = #tpu.core_type<tc>, window_params = [{transform_indices = @transform_0, window_bounds = array<i64: 8, 32>}, {pipeline_mode = #tpu.pipeline_mode<synchronous>, transform_indices = @transform_1, window_bounds = array<i64: 32, 64>}, {pipeline_mode = #tpu.pipeline_mode<synchronous>, transform_indices = @transform_2, window_bounds = array<i64: 1, 64>}, {pipeline_mode = #tpu.pipeline_mode<synchronous>, transform_indices = @transform_3, window_bounds = array<i64: 64, 128>}, {pipeline_mode = #tpu.pipeline_mode<synchronous>, transform_indices = @transform_4, window_bounds = array<i64: 1, 128>}, {pipeline_mode = #tpu.pipeline_mode<synchronous>, transform_indices = @transform_5, window_bounds = array<i64: 128, 32>}, {pipeline_mode = #tpu.pipeline_mode<synchronous>, transform_indices = @transform_6, window_bounds = array<i64: 1, 32>}, {pipeline_mode = #tpu.pipeline_mode<synchronous>, transform_indices = @transform_7, window_bounds = array<i64: 1, 32>}, {pipeline_mode = #tpu.pipeline_mode<synchronous>, transform_indices = @transform_8, window_bounds = array<i64: 1, 32>}, {transform_indices = @transform_9, window_bounds = array<i64: 8, 32>}]} {
    %c0 = arith.constant 0 : index
    %c0_0 = arith.constant 0 : index
    %0 = vector.load %arg1[%c0, %c0_0] : memref<8x32xf32, #tpu.memory_space<vmem>>, vector<8x32xf32>
    %c0_1 = arith.constant 0 : index
    %c0_2 = arith.constant 0 : index
    %1 = vector.load %arg2[%c0_1, %c0_2] : memref<32x64xf32, #tpu.memory_space<vmem>>, vector<32x64xf32>
    %cst = arith.constant dense<0.000000e+00> : vector<8x64xf32>
    %2 = tpu.matmul %0, %1, %cst {dimension_numbers = #tpu.dot_dimension_numbers<[1], [0], [0], [1], [0, 0, 1, 1], [], []>} : vector<8x32xf32>, vector<32x64xf32>, vector<8x64xf32> -> vector<8x64xf32>
    %c0_3 = arith.constant 0 : index
    %c0_4 = arith.constant 0 : index
    %3 = vector.load %arg3[%c0_3, %c0_4] : memref<1x64xf32, #tpu.memory_space<vmem>>, vector<1x64xf32>
    %4 = vector.broadcast %3 : vector<1x64xf32> to vector<8x64xf32>
    %5 = arith.addf %2, %4 : vector<8x64xf32>
    %cst_5 = arith.constant 0.000000e+00 : f32
    %6 = vector.broadcast %cst_5 : f32 to vector<8x64xf32>
    %7 = arith.maximumf %5, %6 : vector<8x64xf32>
    %c0_6 = arith.constant 0 : index
    %c0_7 = arith.constant 0 : index
    %8 = vector.load %arg4[%c0_6, %c0_7] : memref<64x128xf32, #tpu.memory_space<vmem>>, vector<64x128xf32>
    %cst_8 = arith.constant dense<0.000000e+00> : vector<8x128xf32>
    %9 = tpu.matmul %7, %8, %cst_8 {dimension_numbers = #tpu.dot_dimension_numbers<[1], [0], [0], [1], [0, 0, 1, 1], [], []>} : vector<8x64xf32>, vector<64x128xf32>, vector<8x128xf32> -> vector<8x128xf32>
    %c0_9 = arith.constant 0 : index
    %c0_10 = arith.constant 0 : index
    %10 = vector.load %arg5[%c0_9, %c0_10] : memref<1x128xf32, #tpu.memory_space<vmem>>, vector<1x128xf32>
    %11 = vector.broadcast %10 : vector<1x128xf32> to vector<8x128xf32>
    %12 = arith.addf %9, %11 : vector<8x128xf32>
    %cst_11 = arith.constant 0.000000e+00 : f32
    %13 = vector.broadcast %cst_11 : f32 to vector<8x128xf32>
    %14 = arith.maximumf %12, %13 : vector<8x128xf32>
    %c0_12 = arith.constant 0 : index
    %c0_13 = arith.constant 0 : index
    %15 = vector.load %arg6[%c0_12, %c0_13] : memref<128x32xf32, #tpu.memory_space<vmem>>, vector<128x32xf32>
    %cst_14 = arith.constant dense<0.000000e+00> : vector<8x32xf32>
    %16 = tpu.matmul %14, %15, %cst_14 {dimension_numbers = #tpu.dot_dimension_numbers<[1], [0], [0], [1], [0, 0, 1, 1], [], []>} : vector<8x128xf32>, vector<128x32xf32>, vector<8x32xf32> -> vector<8x32xf32>
    %c0_15 = arith.constant 0 : index
    %c0_16 = arith.constant 0 : index
    %17 = vector.load %arg7[%c0_15, %c0_16] : memref<1x32xf32, #tpu.memory_space<vmem>>, vector<1x32xf32>
    %18 = vector.broadcast %17 : vector<1x32xf32> to vector<8x32xf32>
    %19 = arith.addf %16, %18 : vector<8x32xf32>
    %cst_17 = arith.constant dense<0.000000e+00> : vector<8xf32>
    %20 = vector.multi_reduction <add>, %19, %cst_17 [1] : vector<8x32xf32> to vector<8xf32>
    %21 = vector.shape_cast %20 : vector<8xf32> to vector<8x1xf32>
    %cst_18 = arith.constant 3.125000e-02 : f32
    %22 = vector.broadcast %cst_18 : f32 to vector<8x1xf32>
    %23 = arith.mulf %21, %22 : vector<8x1xf32>
    %24 = vector.broadcast %23 : vector<8x1xf32> to vector<8x32xf32>
    %25 = arith.subf %19, %24 : vector<8x32xf32>
    %26 = arith.mulf %25, %25 : vector<8x32xf32>
    %cst_19 = arith.constant dense<0.000000e+00> : vector<8xf32>
    %27 = vector.multi_reduction <add>, %26, %cst_19 [1] : vector<8x32xf32> to vector<8xf32>
    %28 = vector.shape_cast %27 : vector<8xf32> to vector<8x1xf32>
    %cst_20 = arith.constant 3.125000e-02 : f32
    %29 = vector.broadcast %cst_20 : f32 to vector<8x1xf32>
    %30 = arith.mulf %28, %29 : vector<8x1xf32>
    %cst_21 = arith.constant 9.99999974E-6 : f32
    %31 = vector.broadcast %cst_21 : f32 to vector<8x1xf32>
    %32 = arith.addf %30, %31 : vector<8x1xf32>
    %33 = math.rsqrt %32 : vector<8x1xf32>
    %34 = vector.broadcast %33 : vector<8x1xf32> to vector<8x32xf32>
    %35 = arith.mulf %25, %34 : vector<8x32xf32>
    %c0_22 = arith.constant 0 : index
    %c0_23 = arith.constant 0 : index
    %36 = vector.load %arg8[%c0_22, %c0_23] : memref<1x32xf32, #tpu.memory_space<vmem>>, vector<1x32xf32>
    %37 = vector.broadcast %36 : vector<1x32xf32> to vector<8x32xf32>
    %38 = arith.mulf %35, %37 : vector<8x32xf32>
    %c0_24 = arith.constant 0 : index
    %c0_25 = arith.constant 0 : index
    %39 = vector.load %arg9[%c0_24, %c0_25] : memref<1x32xf32, #tpu.memory_space<vmem>>, vector<1x32xf32>
    %40 = vector.broadcast %39 : vector<1x32xf32> to vector<8x32xf32>
    %41 = arith.addf %38, %40 : vector<8x32xf32>
    %c0_26 = arith.constant 0 : index
    %c0_27 = arith.constant 0 : index
    %42 = vector.load %arg10[%c0_26, %c0_27] : memref<8x32xf32, #tpu.memory_space<vmem>>, vector<8x32xf32>
    tpu.vector_store %arg10[%c0_26, %c0_27], %41 {strides = array<i32>} : memref<8x32xf32, #tpu.memory_space<vmem>>, vector<8x32xf32>,
    return
  }
  func.func @transform_0(%arg0: i32) -> (i32, i32) {
    %c0_i32 = arith.constant 0 : i32
    %c0_i32_0 = arith.constant 0 : i32
    return %arg0, %c0_i32 : i32, i32
  }
  func.func @transform_1(%arg0: i32) -> (i32, i32) {
    %c0_i32 = arith.constant 0 : i32
    %c0_i32_0 = arith.constant 0 : i32
    %c0_i32_1 = arith.constant 0 : i32
    return %c0_i32, %c0_i32_0 : i32, i32
  }
  func.func @transform_2(%arg0: i32) -> (i32, i32) {
    %c0_i32 = arith.constant 0 : i32
    %c0_i32_0 = arith.constant 0 : i32
    %c0_i32_1 = arith.constant 0 : i32
    return %c0_i32, %c0_i32_0 : i32, i32
  }
  func.func @transform_3(%arg0: i32) -> (i32, i32) {
    %c0_i32 = arith.constant 0 : i32
    %c0_i32_0 = arith.constant 0 : i32
    %c0_i32_1 = arith.constant 0 : i32
    return %c0_i32, %c0_i32_0 : i32, i32
  }
  func.func @transform_4(%arg0: i32) -> (i32, i32) {
    %c0_i32 = arith.constant 0 : i32
    %c0_i32_0 = arith.constant 0 : i32
    %c0_i32_1 = arith.constant 0 : i32
    return %c0_i32, %c0_i32_0 : i32, i32
  }
  func.func @transform_5(%arg0: i32) -> (i32, i32) {
    %c0_i32 = arith.constant 0 : i32
    %c0_i32_0 = arith.constant 0 : i32
    %c0_i32_1 = arith.constant 0 : i32
    return %c0_i32, %c0_i32_0 : i32, i32
  }
  func.func @transform_6(%arg0: i32) -> (i32, i32) {
    %c0_i32 = arith.constant 0 : i32
    %c0_i32_0 = arith.constant 0 : i32
    %c0_i32_1 = arith.constant 0 : i32
    return %c0_i32, %c0_i32_0 : i32, i32
  }
  func.func @transform_7(%arg0: i32) -> (i32, i32) {
    %c0_i32 = arith.constant 0 : i32
    %c0_i32_0 = arith.constant 0 : i32
    %c0_i32_1 = arith.constant 0 : i32
    return %c0_i32, %c0_i32_0 : i32, i32
  }
  func.func @transform_8(%arg0: i32) -> (i32, i32) {
    %c0_i32 = arith.constant 0 : i32
    %c0_i32_0 = arith.constant 0 : i32
    %c0_i32_1 = arith.constant 0 : i32
    return %c0_i32, %c0_i32_0 : i32, i32
  }
  func.func @transform_9(%arg0: i32) -> (i32, i32) {
    %c0_i32 = arith.constant 0 : i32
    %c0_i32_0 = arith.constant 0 : i32
    return %arg0, %c0_i32 : i32, i32
  }
}

</mosaic_0001>

<bundles_post_ra>
// kernel: modality_token_encoder.1
= control target key start
LH: loop header
LB: loop body
LE: loop exit
PB: predicated region body
PF: predicated region fallthrough
CT: control target
= control target key end

     0   :  { %s389_s0 = inlined_call_operand.vmem [shape: f32[8,32], index: 0, kind: input, shape index: {}]   ;;  %s390_s1 = inlined_call_operand.vmem [shape: f32[32,64], index: 1, kind: input, shape index: {}]   ;;  %s391_s2 = inlined_call_operand.vmem [shape: f32[1,64], index: 2, kind: input, shape index: {}]   ;;  %s392_s3 = inlined_call_operand.vmem [shape: f32[64,128], index: 3, kind: input, shape index: {}]   ;;  %s393_s4 = inlined_call_operand.vmem [shape: f32[1,128], index: 4, kind: input, shape index: {}]   ;;  %s394_s5 = inlined_call_operand.vmem [shape: f32[128,32], index: 5, kind: input, shape index: {}]   ;;  %s395_s6 = inlined_call_operand.vmem [shape: f32[1,32], index: 6, kind: input, shape index: {}]   ;;  %s396_s7 = inlined_call_operand.vmem [shape: f32[1,32], index: 7, kind: input, shape index: {}]   ;;  %s397_s8 = inlined_call_operand.vmem [shape: f32[1,32], index: 8, kind: input, shape index: {}]   ;;  %s398_s9 = inlined_call_operand.hbm [shape: f32[8,32], index: 9, kind: output, shape index: {}]  }
   0x1   :  { %v37_v0 = vld [vmem:[%s390_s1 + $0x18] sm:$0xff]  ;;  %v36_v1 = vld [vmem:[%s390_s1 + $0x10] sm:$0xff]  ;;  %v35_v3 = vld [vmem:[%s390_s1 + $0x8] sm:$0xff] }
   0x2   :  { %58 = vmatpush.msra.mxu0 %v37_v0  ;;  %v74_v2 = vld [vmem:[%s392_s3 + $0x38] sm:$0xff]  ;;  %v34_v4 = vld [vmem:[%s390_s1] sm:$0xff]  ;;  %v73_v5 = vld [vmem:[%s392_s3 + $0x30] sm:$0xff] }
   0x3   :  { %91 = vmatpush.msra.mxu1 %v74_v2  ;;  %v33_v6 = vld [vmem:[%s389_s0] sm:$0xff]  ;;  %v72_v7 = vld [vmem:[%s392_s3 + $0x28] sm:$0xff] }
   0x4   :  { %59 = vmatpush.msra.mxu0 %v36_v1 }
   0x5   :  { %92 = vmatpush.msra.mxu1 %v73_v5 }
   0x6   :  { %14 = vsyncpa [#allocation3], 0  ;;  %60 = vmatpush.msra.mxu0 %v35_v3  ;;  %vm42_vm0 = vcmask 261120   ;;  %v71_v8 = vld [vmem:[%s392_s3 + $0x20] sm:$0xff]  ;;  %v70_v9 = vld [vmem:[%s392_s3 + $0x18] sm:$0xff]  ;;  %vm79_vm1 = vcmask 523264  }
   0x7   :  { %93 = vmatpush.msra.mxu1 %v72_v7  ;;  %v69_v10 = vld [vmem:[%s392_s3 + $0x10] sm:$0xff]  ;;  %v68_v11 = vld [vmem:[%s392_s3 + $0x8] sm:$0xff]  ;;  %v67_v12 = vld [vmem:[%s392_s3] sm:$0xff]  ;;  %s229_s25 = smov [#allocation2]   ;;  %s184_s0 = sshll.u32 %s398_s9, 4  ;;  %s185_s0 = int_to_ptr.hbm [resolvable:$true] %s184_s0 }
   0x8   :  { %61 = vmatpush.msra.mxu0 %v34_v4  ;;  %v119_v13 = vld [vmem:[%s394_s5 + $0x78] sm:$0xff]  ;;  %v118_v14 = vld [vmem:[%s394_s5 + $0x70] sm:$0xff]  ;;  %v117_v15 = vld [vmem:[%s394_s5 + $0x68] sm:$0xff]  ;;  %s182_s1 = sshll.u32 %s229_s25, 4  ;;  %s183_s1 = int_to_ptr.vmem [resolvable:$true] %s182_s1 }
   0x9   :  { %193 = vmatmul.msk.f32.vlgmr.msra.gmra.mxu0 %vm42_vm0, %v33_v6  ;;  %94 = vmatpush.msra.mxu1 %v71_v8  ;;  %v116_v16 = vld [vmem:[%s394_s5 + $0x60] sm:$0xff]  ;;  %v115_v17 = vld [vmem:[%s394_s5 + $0x58] sm:$0xff]  ;;  %v114_v18 = vld [vmem:[%s394_s5 + $0x50] sm:$0xff] }
   0xa   :  { %124 = vmatpush.msra.mxu2 %v119_v13  ;;  %v113_v19 = vld [vmem:[%s394_s5 + $0x48] sm:$0xff]  ;;  %v112_v20 = vld [vmem:[%s394_s5 + $0x40] sm:$0xff]  ;;  %v111_v21 = vld [vmem:[%s394_s5 + $0x38] sm:$0xff] }
   0xb   :  { %95 = vmatpush.msra.mxu1 %v70_v9  ;;  %v110_v22 = vld [vmem:[%s394_s5 + $0x30] sm:$0xff]  ;;  %v109_v23 = vld [vmem:[%s394_s5 + $0x28] sm:$0xff]  ;;  %v108_v24 = vld [vmem:[%s394_s5 + $0x20] sm:$0xff] }
   0xc   :  { %125 = vmatpush.msra.mxu2 %v118_v14  ;;  %v107_v25 = vld [vmem:[%s394_s5 + $0x18] sm:$0xff]  ;;  %v196_v26 = vld [vmem:[%s391_s2] ss:$0 sm:$0xff]  ;;  %v106_v30 = vld [vmem:[%s394_s5 + $0x10] sm:$0xff] }
   0xd   :  { %96 = vmatpush.msra.mxu1 %v69_v10  ;;  %v105_v31 = vld [vmem:[%s394_s5 + $0x8] sm:$0xff]  ;;  %v104_v32 = vld [vmem:[%s394_s5] sm:$0xff] }
   0xe   :  { %126 = vmatpush.msra.mxu2 %v117_v15  ;;  %v197_v33 = vld [vmem:[%s393_s4] ss:$0 sm:$0xff] }
   0xf   :  { %97 = vmatpush.msra.mxu1 %v68_v11  ;;  %v198_v37 = vld [vmem:[%s395_s6] ss:$0 sm:$0xff] }
  0x10   :  { %127 = vmatpush.msra.mxu2 %v116_v16  ;;  %v199_v55 = vld [vmem:[%s396_s7] ss:$0 sm:$0xff] }
  0x11   :  { %98 = vmatpush.msra.mxu1 %v67_v12  ;;  %v200_v58 = vld [vmem:[%s397_s8] ss:$0 sm:$0xff] }
  0x12   :  { %128 = vmatpush.msra.mxu2 %v115_v17 }
  0x14   :  { %129 = vmatpush.msra.mxu2 %v114_v18 }
  0x16   :  { %130 = vmatpush.msra.mxu2 %v113_v19 }
  0x18   :  { %131 = vmatpush.msra.mxu2 %v112_v20 }
  0x1a   :  { %132 = vmatpush.msra.mxu2 %v111_v21 }
  0x1c   :  { %133 = vmatpush.msra.mxu2 %v110_v22 }
  0x1e   :  { %134 = vmatpush.msra.mxu2 %v109_v23 }
  0x20   :  { %135 = vmatpush.msra.mxu2 %v108_v24 }
  0x22   :  { %136 = vmatpush.msra.mxu2 %v107_v25 }
  0x24   :  { %137 = vmatpush.msra.mxu2 %v106_v30 }
  0x26   :  { %138 = vmatpush.msra.mxu2 %v105_v31 }
  0x28   :  { %139 = vmatpush.msra.mxu2 %v104_v32 }
  0x86   :  { %v63_v27 = vpop.f32.mrf.mxu0 }
  0x87   :  { %v64_v28 = vadd.f32 %v196_v26, %v63_v27 }
  0x89   :  { %v66_v29 = vmax.f32 %v64_v28, 0.0 }
  0x8b   :  { %194 = vmatmul.msk.f32.vlgmr.msra.gmra.mxu1 %vm79_vm1, %v66_v29 }
 0x108   :  { %v100_v34 = vpop.f32.mrf.mxu1 }
 0x109   :  { %v101_v35 = vadd.f32 %v197_v33, %v100_v34 }
 0x10b   :  { %v103_v36 = vmax.f32 %v101_v35, 0.0 }
 0x10d   :  { %140 = vmatmul.f32.vlgmr.msra.gmra.mxu2 %v103_v36 }
 0x190   :  { %v141_v38 = vpop.f32.mrf.mxu2 }
 0x191   :  { %v142_v39 = vadd.f32 %v198_v37, %v141_v38 }
 0x193   :  { %v144_v40 = vsel %vm42_vm0, %v142_v39, 0.0 }
 0x194   :  { %145 = vadd.xlane.f32.xlu0 %v144_v40 }
 0x207   :  { %v146_v41 = vpop.xlane.xlu0 %145 }
 0x208   :  { %v147_v42 = vmul.f32 0.03125, %v146_v41 }
 0x20a   :  { %v148_v43 = vsub.f32 %v142_v39, %v147_v42 }
 0x20c   :  { %v149_v44 = vmul.f32 %v148_v43, %v148_v43 }
 0x20e   :  { %v150_v45 = vsel %vm42_vm0, %v149_v44, 0.0 }
 0x20f   :  { %151 = vadd.xlane.f32.xlu0 %v150_v45 }
 0x282   :  { %v152_v46 = vpop.xlane.xlu0 %151 }
 0x283   :  { %v153_v47 = vmul.f32 0.03125, %v152_v46 }
 0x285   :  { %v154_v48 = vadd.f32 1e-05, %v153_v47 }
 0x287   :  { %201 = vrsqrt.f32 %v154_v48  ;;  %vm161_vm3 = vweird.f32 %v154_v48 }
 0x28d   :  { %v202_v49 = vpop.eup %201 }
 0x28e   :  { %v156_v50 = vmul.f32 %v202_v49, %v154_v48  ;;  %vm162_vm2 = vweird.f32 %v202_v49 }
 0x28f   :  { %vm163_vm4 = vmor %vm161_vm3, %vm162_vm2 }
 0x290   :  { %v157_v51 = vmul.f32 %v202_v49, %v156_v50 }
 0x292   :  { %v158_v52 = vmul.f32 0.5, %v157_v51 }
 0x294   :  { %v159_v53 = vsub.f32 1.5, %v158_v52 }
 0x296   :  { %v160_v54 = vmul.f32 %v202_v49, %v159_v53 }
 0x298   :  { %v164_v56 = vsel %vm163_vm4, %v202_v49, %v160_v54 }
 0x299   :  { %v165_v57 = vmul.f32 %v164_v56, %v148_v43 }
 0x29b   :  { %v170_v59 = vmul.f32 %v199_v55, %v165_v57 }
 0x29d   :  { %v175_v60 = vadd.f32 %v200_v58, %v170_v59 }
 0x29f   :  { %176 = vst.msk [vmem:[#allocation2] sm:$0xff] %vm42_vm0, %v175_v60 }
 0x2a0   :  { %187 = dma.vmem_to_hbm [thread:$0]  %s183_s1, 128, %s185_s0, [#allocation3]  }
 0x2a1   :  { %227 = dma.done.wait [#allocation3], 128  }
 0x2a2   :  { %228 = vsyncadd [#allocation3], 4294967168 }
 0x2a3   :  { %192 = vsyncpa [#allocation3], 1 }

</bundles_post_ra>
